<compile_context>
chip_gen: v7x
topology: tpu7x:2x2x1
jax: 0.10.0
libtpu: 0.0.40
codegen_flags: <defaults>
</compile_context>

<pallas_src>
import math

import jax
import jax.numpy as jnp
from jax.experimental import pallas as pl
from jax.experimental.pallas import tpu as pltpu


def _pos_enc_kernel(x_ref, pe_ref, o_ref):
    # x_ref:  (TS, B, D)   tile covering TS sequence positions, all batches.
    # pe_ref: (S_pad, D)   resident full-extent pe block (already in x.dtype).
    ts = x_ref.shape[0]
    start = pl.program_id(0) * ts
    if ts % 8 == 0:
        start = pl.multiple_of(start, 8)
    pe = pe_ref[pl.ds(start, ts), :]                       # (TS, D)
    # Note: the add happens in x.dtype; PyTorch would promote bf16 x + fp32 pe to
    # fp32 (difference <= 1 bf16 ulp).  Output dtype follows x, as is conventional.
    o_ref[...] = x_ref[...] + pe[:, None, :]


def make_positional_encoding_table(max_len: int, d_model: int, dtype=jnp.float32):
    """Deterministic sin/cos table, same construction as the PyTorch __init__."""
    position = jnp.arange(max_len, dtype=jnp.float32)[:, None]            # [max_len, 1]
    div_term = jnp.exp(
        jnp.arange(0, d_model, 2, dtype=jnp.float32) * (-math.log(10000.0) / d_model)
    )                                                                      # [d_model//2]
    angles = position * div_term                                           # [max_len, d_model//2]
    pe = jnp.zeros((max_len, d_model), jnp.float32)
    pe = pe.at[:, 0::2].set(jnp.sin(angles))
    pe = pe.at[:, 1::2].set(jnp.cos(angles))
    return pe.astype(dtype)                                                # [max_len, d_model]


def _padded_bytes_per_pos(B: int, D: int, itemsize: int) -> int:
    # VMEM footprint of one sequence position, with the two minor dims padded to the
    # (8, 128) vreg tile (conservative for small B / D).
    pad_b = -(-B // 8) * 8
    pad_d = -(-D // 128) * 128
    return pad_b * pad_d * itemsize


def _choose_seq_tile(S: int, B: int, D: int, itemsize: int,
                     target_bytes: int = 4 << 20, min_grid_steps: int = 2) -> int:
    """Sequence positions per grid step, targeting ~4 MiB x tiles.

    ~4 MiB tiles keep the ~0.35 us per-grid-step overhead below ~5% even at v7x's
    3.2 TB/s HBM; the tile only constrains the *leading* (unblocked-minor) axis, so
    it can be any positive integer — no multiple-of-8 floor (pe is resident and
    sliced in-kernel).  For arrays big enough to matter we force >= 2 grid steps so
    v7x's two TensorCores both get work (no-op on v5e/v6e).
    """
    bytes_per_pos = _padded_bytes_per_pos(B, D, itemsize)
    ts = max(1, target_bytes // bytes_per_pos)
    ts = min(ts, S)
    total_bytes = S * bytes_per_pos
    if ts >= S and total_bytes > (2 << 20) and S >= min_grid_steps:
        ts = -(-S // min_grid_steps)            # ceil(S / min_grid_steps)
    return int(max(1, ts))


def positional_encoding(x, pe_table, seq_tile: int | None = None):
    """x: [S, B, D]; pe_table: [max_len, D] (float32 sin/cos table), max_len >= S."""
    S, B, D = x.shape
    assert pe_table.shape[0] >= S and pe_table.shape[1] == D

    itemsize = jnp.dtype(x.dtype).itemsize

    ts = seq_tile if seq_tile is not None else _choose_seq_tile(S, B, D, itemsize)
    ts = int(min(max(ts, 1), S))
    num_blocks = int(pl.cdiv(S, ts))

    # One-time slice + cast (S x D elements, negligible); no [S, 1, D] broadcast
    # and no widened pe buffer in VMEM.
    pe_s = pe_table[:S].astype(x.dtype)

    # Pad pe rows up to num_blocks*ts so the in-kernel dynamic slice of the resident
    # pe block never reads out of bounds on the last (partial) x block.
    S_pad = num_blocks * ts
    if S_pad != S:
        pe_s = jnp.pad(pe_s, ((0, S_pad - S), (0, 0)))

    # Explicit scoped-VMEM limit: double-buffered x-in + out (4 buffers) plus the
    # (conservatively double-counted) resident pe block, with headroom.  This keeps
    # 4 MiB tiles legal on v5e's 16 MiB default while staying well under every
    # generation's physical VMEM (v7x: 64 MiB).
    tile_bytes = ts * _padded_bytes_per_pos(B, D, itemsize)
    pe_bytes = (-(-S_pad // 8) * 8) * (-(-D // 128) * 128) * itemsize
    vmem_need = 4 * tile_bytes + 2 * pe_bytes
    vmem_limit_bytes = int(min(max(vmem_need + (4 << 20), 32 << 20), 48 << 20))

    grid = (num_blocks,)

    cost = pl.CostEstimate(
        flops=int(S) * int(B) * int(D),
        transcendentals=0,
        bytes_accessed=2 * S * B * D * itemsize + S_pad * D * itemsize,
    )

    out = pl.pallas_call(
        _pos_enc_kernel,
        out_shape=jax.ShapeDtypeStruct((S, B, D), x.dtype),
        grid=grid,
        in_specs=[
            pl.BlockSpec((ts, B, D), lambda i: (i, 0, 0)),   # x: blocked on seq only
            pl.BlockSpec((S_pad, D), lambda i: (0, 0)),      # pe: resident full-extent
        ],
        out_specs=pl.BlockSpec((ts, B, D), lambda i: (i, 0, 0)),
        input_output_aliases={0: 0},                         # in-place add into x's buffer
        compiler_params=pltpu.CompilerParams(
            dimension_semantics=("parallel",),
            vmem_limit_bytes=vmem_limit_bytes,
        ),
        cost_estimate=cost,
    )(x, pe_s)

    # TODO(synk): train-mode dropout (p=0.1, scaled Bernoulli mask) not implemented;
    # eval-mode dropout is the identity, which is what is reproduced here.
    return out


if __name__ == "__main__":
    key = jax.random.PRNGKey(0)

    # --- Test 1: small shape consistent with the module's [seq, batch, d_model] input.
    S, B, D = 8, 2, 32
    MAX_LEN = 64
    k1, k2, k3 = jax.random.split(key, 3)
    x = jax.random.normal(k1, (S, B, D), dtype=jnp.float32)
    pe_table = make_positional_encoding_table(MAX_LEN, D)

    out = jax.block_until_ready(positional_encoding(x, pe_table))
    ref = x + pe_table[:S][:, None, :]
    assert out.shape == (S, B, D)
    assert jnp.allclose(out, ref, atol=1e-6), "mismatch vs reference (test 1)"

    # --- Test 2: multi-step tiled path, partial last block, 8-aligned and unaligned tiles.
    S2, B2, D2 = 20, 4, 32
    x2 = jax.random.normal(k2, (S2, B2, D2), dtype=jnp.float32)
    pe_table2 = make_positional_encoding_table(MAX_LEN, D2)
    ref2 = x2 + pe_table2[:S2][:, None, :]
    out2a = jax.block_until_ready(positional_encoding(x2, pe_table2, seq_tile=8))
    assert jnp.allclose(out2a, ref2, atol=1e-6), "mismatch vs reference (test 2a)"
    out2b = jax.block_until_ready(positional_encoding(x2, pe_table2, seq_tile=7))
    assert jnp.allclose(out2b, ref2, atol=1e-6), "mismatch vs reference (test 2b)"

    # --- Test 3: bf16 pass-through (pe pre-cast in the wrapper, add in bf16).
    x3 = jax.random.normal(k3, (S, B, D), dtype=jnp.float32).astype(jnp.bfloat16)
    out3 = jax.block_until_ready(positional_encoding(x3, pe_table))
    ref3 = x3 + pe_table[:S][:, None, :].astype(jnp.bfloat16)
    assert jnp.allclose(out3.astype(jnp.float32), ref3.astype(jnp.float32), atol=1e-2), \
        "mismatch vs reference (test 3)"

    print("KERNEL_OK")
</pallas_src>

<mosaic_0001>
module attributes {stable_mosaic.version = 11 : i64} {
  func.func @_pos_enc_kernel(%arg0: i32, %arg1: memref<8x2x32xf32, #tpu.memory_space<vmem>>, %arg2: memref<8x32xf32, #tpu.memory_space<vmem>>, %arg3: memref<8x2x32xf32, #tpu.memory_space<vmem>>) attributes {dimension_semantics = [#tpu.dimension_semantics<parallel>], iteration_bounds = array<i64: 1>, scalar_prefetch = 0 : i64, scratch_operands = 0 : i64, tpu.core_type = #tpu.core_type<tc>, window_params = [{transform_indices = @transform_0, window_bounds = array<i64: 8, 2, 32>}, {pipeline_mode = #tpu.pipeline_mode<synchronous>, transform_indices = @transform_1, window_bounds = array<i64: 8, 32>}, {transform_indices = @transform_2, window_bounds = array<i64: 8, 2, 32>}]} {
    %c8_i32 = arith.constant 8 : i32
    %0 = arith.muli %arg0, %c8_i32 : i32
    %1 = tpu.assume_multiple %0, 8 : i32
    %2 = arith.index_cast %1 : i32 to index
    %c0 = arith.constant 0 : index
    %3 = vector.load %arg2[%2, %c0] : memref<8x32xf32, #tpu.memory_space<vmem>>, vector<8x32xf32>
    %c0_0 = arith.constant 0 : index
    %c0_1 = arith.constant 0 : index
    %c0_2 = arith.constant 0 : index
    %4 = vector.load %arg1[%c0_0, %c0_1, %c0_2] : memref<8x2x32xf32, #tpu.memory_space<vmem>>, vector<8x2x32xf32>
    %5 = vector.shape_cast %3 : vector<8x32xf32> to vector<8x1x32xf32>
    %6 = vector.broadcast %5 : vector<8x1x32xf32> to vector<8x2x32xf32>
    %7 = arith.addf %4, %6 : vector<8x2x32xf32>
    %c0_3 = arith.constant 0 : index
    %c0_4 = arith.constant 0 : index
    %c0_5 = arith.constant 0 : index
    %8 = vector.load %arg3[%c0_3, %c0_4, %c0_5] : memref<8x2x32xf32, #tpu.memory_space<vmem>>, vector<8x2x32xf32>
    tpu.vector_store %arg3[%c0_3, %c0_4, %c0_5], %7 {strides = array<i32>} : memref<8x2x32xf32, #tpu.memory_space<vmem>>, vector<8x2x32xf32>,
    return
  }
  func.func @transform_0(%arg0: i32) -> (i32, i32, i32) {
    %c0_i32 = arith.constant 0 : i32
    %c0_i32_0 = arith.constant 0 : i32
    %c0_i32_1 = arith.constant 0 : i32
    return %arg0, %c0_i32, %c0_i32_0 : i32, i32, i32
  }
  func.func @transform_1(%arg0: i32) -> (i32, i32) {
    %c0_i32 = arith.constant 0 : i32
    %c0_i32_0 = arith.constant 0 : i32
    %c0_i32_1 = arith.constant 0 : i32
    return %c0_i32, %c0_i32_0 : i32, i32
  }
  func.func @transform_2(%arg0: i32) -> (i32, i32, i32) {
    %c0_i32 = arith.constant 0 : i32
    %c0_i32_0 = arith.constant 0 : i32
    %c0_i32_1 = arith.constant 0 : i32
    return %arg0, %c0_i32, %c0_i32_0 : i32, i32, i32
  }
}

</mosaic_0001>

<bundles_post_ra>
// kernel: tpu_custom_call.1
= control target key start
LH: loop header
LB: loop body
LE: loop exit
PB: predicated region body
PF: predicated region fallthrough
CT: control target
= control target key end

     0   :  { %7 = vsyncpa [#allocation3], 0  ;;  %s275_s0 = inlined_call_operand.hbm [shape: f32[8,2,32], index: 0, kind: input, shape index: {}, may-alias: {0,2}]   ;;  %s276_s1 = inlined_call_operand.vmem [shape: f32[8,32], index: 1, kind: input, shape index: {}]   ;;  %s277_s2 = inlined_call_operand.hbm [shape: f32[8,2,32], index: 2, kind: output, shape index: {}, may-alias: {0,2}]  }
   0x1   :  { %8 = vsyncpa [#allocation4], 0  ;;  %s214_s9 = smov [#allocation2]   ;;  %s166_s13 = scalar_lea.hbm %s275_s0, 256 }
   0x2   :  { %s14_s10 = sshll.u32 %s214_s9, 4  ;;  %p167_p0 = scmp.ne.s32.totalorder %s275_s0, %s166_s13  ;;  %s15_s10 = int_to_ptr.vmem [resolvable:$true] %s14_s10 }
   0x3   :  { %p170_p1 = scmp.lt.u32.totalorder %s166_s13, %s275_s0 }
   0x5   :  { %p172_p2 = pnand %p170_p1, %p167_p0 }
   0x7   :  { %175 = shalt.err (!%p172_p2)
}
   0x8   :  { %s176_s18 = scalar_lea.vmem %s15_s10, 256  ;;  %p181_p4 = scmp.lt.s32.totalorder %s15_s10, %s15_s10 }
   0x9   :  { %p177_p3 = scmp.ne.s32.totalorder %s15_s10, %s176_s18  ;;  %p182_p5 = scmp.lt.s32.totalorder %s176_s18, %s176_s18 }
   0xb   :  { %p183_p6 = por %p182_p5, %p181_p4 }
   0xd   :  { %p184_p7 = pnand %p183_p6, %p177_p3 }
   0xf   :  { %187 = shalt.err (!%p184_p7)
}
  0x10   :  { %s215_s19 = smov 32   ;;  %s216_s20 = smov 2  }
  0x11   :  { %20 = dma.hbm_to_vmem [thread:$0]  %s275_s0, 256, %s15_s10, [#allocation3], %s215_s19, %s215_s19, %s216_s20  }
  0x12   :  { %210 = dma.done.wait [#allocation3], 256  }
  0x13   :  { %211 = vsyncadd [#allocation3], 4294967040  ;;  %v42_v0 = vlaneseq  ;;  %v217_v1 = vmov 1966171168   ;;  %v28_v6 = vld [vmem:[%s276_s1] sm:$0xff]  ;;  %vm135_vm0 = vcmask 254976  }
  0x14   :  { %v40_v2 = vunpack.c.l.s4 %v217_v1  ;;  %v38_v9 = vcombine.high %v28_v6, %v28_v6  ;;  %v29_v13 = vld [vmem:[#allocation2] sm:$0x3]  ;;  %v30_v18 = vld [vmem:[#allocation2 + $0x2] sm:$0x3]  ;;  %v31_v19 = vld [vmem:[#allocation2 + $0x4] sm:$0x3] }
  0x15   :  { %v43_v3 = vshrl.u32 %v42_v0, 7  ;;  %v33_v25 = vld [vmem:[#allocation2 + $0x8] sm:$0x3]  ;;  %v32_v26 = vld [vmem:[#allocation2 + $0x6] sm:$0x3]  ;;  %s218_s0 = smov [#allocation5]  }
  0x16   :  { %v41_v4 = vunpack.c.0.s8 %v40_v2  ;;  %v34_v33 = vld [vmem:[#allocation2 + $0xa] sm:$0x3]  ;;  %v35_v34 = vld [vmem:[#allocation2 + $0xc] sm:$0x3]  ;;  %v36_v40 = vld [vmem:[#allocation2 + $0xe] sm:$0x3] }
  0x17   :  { %v89_v8 = vsub.s32 0, %v43_v3  ;;  %s149_s1 = sshll.u32 %s218_s0, 4  ;;  %s150_s1 = int_to_ptr.vmem [resolvable:$true] %s149_s1 }
  0x18   :  { %v44_v5 = vsub.s32 %v41_v4, %v43_v3  ;;  %s188_s25 = scalar_lea.vmem %s150_s1, 256  ;;  %p193_p9 = scmp.lt.s32.totalorder %s150_s1, %s150_s1 }
  0x19   :  { %p189_p8 = scmp.ne.s32.totalorder %s150_s1, %s188_s25  ;;  %p194_p10 = scmp.lt.s32.totalorder %s188_s25, %s188_s25 }
  0x1a   :  { %v45_v7 = vrot.slane %v28_v6, %v44_v5  ;;  %v52_v12 = vrot.slane %v38_v9, %v44_v5 }
  0x1b   :  { %p195_p11 = por %p194_p10, %p193_p9 }
  0x1c   :  { %v61_v10 = vrot.slane %v45_v7, %v44_v5  ;;  %v53_v11 = vcombine.high %v45_v7, %v45_v7  ;;  %v68_v17 = vrot.slane %v52_v12, %v44_v5  ;;  %v54_v20 = vcombine.high %v52_v12, %v52_v12 }
  0x1d   :  { %p196_p12 = pnand %p195_p11, %p189_p8 }
  0x1e   :  { %v90_v14 = vrot.slane %v61_v10, %v89_v8  ;;  %v75_v15 = vrot.slane %v53_v11, %v44_v5  ;;  %v83_v16 = vcombine.high %v61_v10, %v61_v10  ;;  %v106_v27 = vrot.slane %v68_v17, %v89_v8 }
  0x1f   :  { %v82_v28 = vrot.slane %v54_v20, %v44_v5  ;;  %v84_v29 = vcombine.high %v68_v17, %v68_v17 }
  0x20   :  { %v127_v21 = vadd.f32 %v90_v14, %v29_v13  ;;  %v94_v22 = vrot.slane %v75_v15, %v89_v8  ;;  %v98_v23 = vrot.slane %v83_v16, %v89_v8  ;;  %v85_v24 = vcombine.high %v75_v15, %v75_v15 }
  0x21   :  { %v131_v35 = vadd.f32 %v106_v27, %v33_v25  ;;  %v110_v36 = vrot.slane %v82_v28, %v89_v8  ;;  %v114_v37 = vrot.slane %v84_v29, %v89_v8  ;;  %v86_v38 = vcombine.high %v82_v28, %v82_v28 }
  0x22   :  { %136 = vst.msk [vmem:[#allocation5] sm:$0x3] %vm135_vm0, %v127_v21  ;;  %v128_v30 = vadd.f32 %v94_v22, %v30_v18  ;;  %v129_v31 = vadd.f32 %v98_v23, %v31_v19  ;;  %v102_v32 = vrot.slane %v85_v24, %v89_v8 }
  0x23   :  { %140 = vst.msk [vmem:[#allocation5 + $0x8] sm:$0x3] %vm135_vm0, %v131_v35  ;;  %v132_v41 = vadd.f32 %v110_v36, %v34_v33  ;;  %v133_v42 = vadd.f32 %v114_v37, %v35_v34  ;;  %v118_v43 = vrot.slane %v86_v38, %v89_v8 }
  0x24   :  { %137 = vst.msk [vmem:[#allocation5 + $0x2] sm:$0x3] %vm135_vm0, %v128_v30  ;;  %138 = vst.msk [vmem:[#allocation5 + $0x4] sm:$0x3] %vm135_vm0, %v129_v31  ;;  %v130_v39 = vadd.f32 %v102_v32, %v32_v26 }
  0x25   :  { %141 = vst.msk [vmem:[#allocation5 + $0xa] sm:$0x3] %vm135_vm0, %v132_v41  ;;  %142 = vst.msk [vmem:[#allocation5 + $0xc] sm:$0x3] %vm135_vm0, %v133_v42  ;;  %v134_v44 = vadd.f32 %v118_v43, %v36_v40 }
  0x26   :  { %139 = vst.msk [vmem:[#allocation5 + $0x6] sm:$0x3] %vm135_vm0, %v130_v39 }
  0x27   :  { %143 = vst.msk [vmem:[#allocation5 + $0xe] sm:$0x3] %vm135_vm0, %v134_v44 }
  0x28   :  { %199 = shalt.err (!%p196_p12)
}
  0x29   :  { %s200_s28 = scalar_lea.hbm %s277_s2, 256 }
  0x2a   :  { %p201_p13 = scmp.ne.s32.totalorder %s277_s2, %s200_s28  ;;  %p204_p0 = scmp.lt.u32.totalorder %s200_s28, %s277_s2 }
  0x2c   :  { %p206_p1 = pnand %p204_p0, %p201_p13 }
  0x2e   :  { %209 = shalt.err (!%p206_p1)
}
  0x2f   :  { %155 = dma.vmem_to_hbm [thread:$0]  %s150_s1, 256, %s277_s2, [#allocation4], %s215_s19, %s215_s19, %s216_s20  }
  0x30   :  { %212 = dma.done.wait [#allocation4], 256  }
  0x31   :  { %213 = vsyncadd [#allocation4], 4294967040 }
  0x32   :  { %159 = vsyncpa [#allocation3], 1 }
  0x33   :  { %160 = vsyncpa [#allocation4], 1 }

</bundles_post_ra>
